<compile_context>
chip_gen: v6e
topology: v6e:2x2x1
jax: 0.10.0
libtpu: 0.0.40
codegen_flags: <defaults>
</compile_context>

<pallas_src>
import math

import jax
import jax.numpy as jnp
from jax import lax
from jax.experimental import pallas as pl
from jax.experimental.pallas import tpu as pltpu

OBS_DIM = 22           # obs_shape[0]
ACT_DIM = 4            # action_shape[0]
HIDDEN = 32            # args.hiddenSize
OUT_DIM = 2 * ACT_DIM  # mean + logdev
LANE = 128


def _actor_kernel(x_ref, w1_ref, b1_ref, w2_ref, b2_ref, w3_ref, b3_ref,
                  out_ref):
    # x_ref  : (TILE_B, OBS_DIM)  -- native batch-major layout (no wrapper transpose)
    # wN_ref : (out, in)          -- PyTorch nn.Linear weight layout
    # bN_ref : (out, 1)
    # out_ref: (OUT_DIM, TILE_B)  -- lane-dense output slab
    x = x_ref[...]

    # fc1 + relu: contract W1's "in" dim (1) with x's OBS_DIM dim (1) -> (HIDDEN, TILE_B)
    h1 = lax.dot_general(w1_ref[...], x, (((1,), (1,)), ((), ())),
                         preferred_element_type=jnp.float32)
    h1 = jnp.maximum(h1 + b1_ref[...], 0.0)

    # fc2 + relu
    h2 = jnp.dot(w2_ref[...], h1, preferred_element_type=jnp.float32)
    h2 = jnp.maximum(h2 + b2_ref[...], 0.0)

    # fc_mean_logdev
    t = jnp.dot(w3_ref[...], h2, preferred_element_type=jnp.float32)
    t = t + b3_ref[...]

    # Rows [0, ACT_DIM) = mean (untouched); rows [ACT_DIM, 2*ACT_DIM) = logdev,
    # clamped to [-20, 2]. Masked clamp -> one lane-dense store, no slicing.
    row = lax.broadcasted_iota(jnp.int32, t.shape, 0)
    out_ref[...] = jnp.where(row >= ACT_DIM, jnp.clip(t, -20.0, 2.0), t)


def actor_forward(x, params, *, tile_b=8192, feature_major_out=False):
    """x: (B, OBS_DIM) f32. params: dict of (out,in) weights / (out,1) biases.

    Returns (mean, logdev), each (B, ACT_DIM) f32 (or (ACT_DIM, B) if
    feature_major_out=True, which skips the wrapper-side output transpose).
    """
    B = x.shape[0]
    x = x.astype(jnp.float32)

    if B <= tile_b:
        # Single full block: block dims == array dims, no padding needed.
        tile_b = B
        num_tiles = 1
    else:
        # Multiple of 128 on the lane/output axis; cap at ceil(B/2) rounded up to
        # 128 so there are always >= 2 tiles for megacore (v7x) batch splitting.
        half = ((pl.cdiv(B, 2) + LANE - 1) // LANE) * LANE
        tile_b = max(LANE, (min(tile_b, half) // LANE) * LANE)
        num_tiles = pl.cdiv(B, tile_b)          # last block may be partial

    w1, b1 = params["w1"], params["b1"]
    w2, b2 = params["w2"], params["b2"]
    w3, b3 = params["w3"], params["b3"]

    # Weights/biases stay VMEM-resident across all batch tiles.
    resident = lambda a: pl.BlockSpec(a.shape, lambda i: (0, 0))

    out_t = pl.pallas_call(
        _actor_kernel,
        out_shape=jax.ShapeDtypeStruct((OUT_DIM, B), jnp.float32),
        grid=(num_tiles,),
        in_specs=[
            pl.BlockSpec((tile_b, OBS_DIM), lambda i: (i, 0)),  # x, native layout
            resident(w1), resident(b1),
            resident(w2), resident(b2),
            resident(w3), resident(b3),
        ],
        out_specs=pl.BlockSpec((OUT_DIM, tile_b), lambda i: (0, i)),
        compiler_params=pltpu.CompilerParams(
            dimension_semantics=("parallel",)),  # megacore on v7x, no-op else
    )(x, w1, b1, w2, b2, w3, b3)

    if feature_major_out:
        # Avoid the output transpose entirely when the consumer accepts (A, B).
        return out_t[:ACT_DIM], out_t[ACT_DIM:]
    out = out_t.T                                # (B, 2*ACT_DIM), PyTorch layout
    return out[:, :ACT_DIM], out[:, ACT_DIM:]


def _xavier_uniform(key, fan_out, fan_in):
    # Matches torch.nn.init.xavier_uniform_ (gain=1); weight shape (out, in).
    limit = math.sqrt(6.0 / (fan_in + fan_out))
    return jax.random.uniform(key, (fan_out, fan_in), jnp.float32, -limit, limit)


def init_params(key, bias_const=0.1):
    k1, k2, k3 = jax.random.split(key, 3)
    return {
        "w1": _xavier_uniform(k1, HIDDEN, OBS_DIM),
        "b1": jnp.full((HIDDEN, 1), bias_const, jnp.float32),
        "w2": _xavier_uniform(k2, HIDDEN, HIDDEN),
        "b2": jnp.full((HIDDEN, 1), bias_const, jnp.float32),
        "w3": _xavier_uniform(k3, OUT_DIM, HIDDEN),
        "b3": jnp.full((OUT_DIM, 1), bias_const, jnp.float32),
    }


def actor_forward_ref(x, params):
    """Pure-JAX reference (PyTorch layout: y = x @ W.T + b)."""
    h1 = jnp.maximum(x @ params["w1"].T + params["b1"][:, 0], 0.0)
    h2 = jnp.maximum(h1 @ params["w2"].T + params["b2"][:, 0], 0.0)
    t = h2 @ params["w3"].T + params["b3"][:, 0]
    return t[:, :ACT_DIM], jnp.clip(t[:, ACT_DIM:], -20.0, 2.0)


if __name__ == "__main__":
    key = jax.random.PRNGKey(0)
    pkey, xkey = jax.random.split(key)
    params = init_params(pkey)

    # Small-batch check (typical single-step RL use): single full block path.
    batch = 2
    x = jax.random.normal(xkey, (batch, OBS_DIM), jnp.float32)
    mean, logdev = actor_forward(x, params)
    jax.block_until_ready((mean, logdev))

    mean_ref, logdev_ref = actor_forward_ref(x, params)
    assert mean.shape == (batch, ACT_DIM) and logdev.shape == (batch, ACT_DIM)
    assert jnp.allclose(mean, mean_ref, atol=1e-5, rtol=1e-5)
    assert jnp.allclose(logdev, logdev_ref, atol=1e-5, rtol=1e-5)

    # Multi-tile path: pipelined grid + ragged (partial) final block, no padding.
    xb = jax.random.normal(jax.random.PRNGKey(1), (300, OBS_DIM), jnp.float32)
    mean_b, logdev_b = actor_forward(xb, params, tile_b=128)
    jax.block_until_ready((mean_b, logdev_b))
    mean_b_ref, logdev_b_ref = actor_forward_ref(xb, params)
    assert jnp.allclose(mean_b, mean_b_ref, atol=1e-5, rtol=1e-5)
    assert jnp.allclose(logdev_b, logdev_b_ref, atol=1e-5, rtol=1e-5)

    # Feature-major output path (skips the wrapper-side output transpose).
    mean_f, logdev_f = actor_forward(xb, params, feature_major_out=True)
    jax.block_until_ready((mean_f, logdev_f))
    assert jnp.allclose(mean_f.T, mean_b_ref, atol=1e-5, rtol=1e-5)
    assert jnp.allclose(logdev_f.T, logdev_b_ref, atol=1e-5, rtol=1e-5)

    print("KERNEL_OK")
</pallas_src>

<mosaic_0001>
module attributes {stable_mosaic.version = 11 : i64} {
  func.func @_actor_kernel(%arg0: i32, %arg1: memref<2x22xf32, #tpu.memory_space<vmem>>, %arg2: memref<32x22xf32, #tpu.memory_space<vmem>>, %arg3: memref<32x1xf32, #tpu.memory_space<vmem>>, %arg4: memref<32x32xf32, #tpu.memory_space<vmem>>, %arg5: memref<32x1xf32, #tpu.memory_space<vmem>>, %arg6: memref<8x32xf32, #tpu.memory_space<vmem>>, %arg7: memref<8x1xf32, #tpu.memory_space<vmem>>, %arg8: memref<8x2xf32, #tpu.memory_space<vmem>>) attributes {dimension_semantics = [#tpu.dimension_semantics<parallel>], iteration_bounds = array<i64: 1>, scalar_prefetch = 0 : i64, scratch_operands = 0 : i64, tpu.core_type = #tpu.core_type<tc>, window_params = [{transform_indices = @transform_0, window_bounds = array<i64: 2, 22>}, {pipeline_mode = #tpu.pipeline_mode<synchronous>, transform_indices = @transform_1, window_bounds = array<i64: 32, 22>}, {pipeline_mode = #tpu.pipeline_mode<synchronous>, transform_indices = @transform_2, window_bounds = array<i64: 32, 1>}, {pipeline_mode = #tpu.pipeline_mode<synchronous>, transform_indices = @transform_3, window_bounds = array<i64: 32, 32>}, {pipeline_mode = #tpu.pipeline_mode<synchronous>, transform_indices = @transform_4, window_bounds = array<i64: 32, 1>}, {pipeline_mode = #tpu.pipeline_mode<synchronous>, transform_indices = @transform_5, window_bounds = array<i64: 8, 32>}, {pipeline_mode = #tpu.pipeline_mode<synchronous>, transform_indices = @transform_6, window_bounds = array<i64: 8, 1>}, {transform_indices = @transform_7, window_bounds = array<i64: 8, 2>}]} {
    %c0 = arith.constant 0 : index
    %c0_0 = arith.constant 0 : index
    %0 = vector.load %arg1[%c0, %c0_0] : memref<2x22xf32, #tpu.memory_space<vmem>>, vector<2x22xf32>
    %c0_1 = arith.constant 0 : index
    %c0_2 = arith.constant 0 : index
    %1 = vector.load %arg2[%c0_1, %c0_2] : memref<32x22xf32, #tpu.memory_space<vmem>>, vector<32x22xf32>
    %cst = arith.constant dense<0.000000e+00> : vector<32x2xf32>
    %2 = tpu.matmul %1, %0, %cst {dimension_numbers = #tpu.dot_dimension_numbers<[1], [1], [0], [0], [0, 0, 1, 0], [], []>} : vector<32x22xf32>, vector<2x22xf32>, vector<32x2xf32> -> vector<32x2xf32>
    %c0_3 = arith.constant 0 : index
    %c0_4 = arith.constant 0 : index
    %3 = vector.load %arg3[%c0_3, %c0_4] : memref<32x1xf32, #tpu.memory_space<vmem>>, vector<32x1xf32>
    %4 = vector.broadcast %3 : vector<32x1xf32> to vector<32x2xf32>
    %5 = arith.addf %2, %4 : vector<32x2xf32>
    %cst_5 = arith.constant 0.000000e+00 : f32
    %6 = vector.broadcast %cst_5 : f32 to vector<32x2xf32>
    %7 = arith.maximumf %5, %6 : vector<32x2xf32>
    %c0_6 = arith.constant 0 : index
    %c0_7 = arith.constant 0 : index
    %8 = vector.load %arg4[%c0_6, %c0_7] : memref<32x32xf32, #tpu.memory_space<vmem>>, vector<32x32xf32>
    %cst_8 = arith.constant dense<0.000000e+00> : vector<32x2xf32>
    %9 = tpu.matmul %8, %7, %cst_8 {dimension_numbers = #tpu.dot_dimension_numbers<[1], [0], [0], [1], [0, 0, 1, 1], [], []>} : vector<32x32xf32>, vector<32x2xf32>, vector<32x2xf32> -> vector<32x2xf32>
    %c0_9 = arith.constant 0 : index
    %c0_10 = arith.constant 0 : index
    %10 = vector.load %arg5[%c0_9, %c0_10] : memref<32x1xf32, #tpu.memory_space<vmem>>, vector<32x1xf32>
    %11 = vector.broadcast %10 : vector<32x1xf32> to vector<32x2xf32>
    %12 = arith.addf %9, %11 : vector<32x2xf32>
    %cst_11 = arith.constant 0.000000e+00 : f32
    %13 = vector.broadcast %cst_11 : f32 to vector<32x2xf32>
    %14 = arith.maximumf %12, %13 : vector<32x2xf32>
    %c0_12 = arith.constant 0 : index
    %c0_13 = arith.constant 0 : index
    %15 = vector.load %arg6[%c0_12, %c0_13] : memref<8x32xf32, #tpu.memory_space<vmem>>, vector<8x32xf32>
    %cst_14 = arith.constant dense<0.000000e+00> : vector<8x2xf32>
    %16 = tpu.matmul %15, %14, %cst_14 {dimension_numbers = #tpu.dot_dimension_numbers<[1], [0], [0], [1], [0, 0, 1, 1], [], []>} : vector<8x32xf32>, vector<32x2xf32>, vector<8x2xf32> -> vector<8x2xf32>
    %c0_15 = arith.constant 0 : index
    %c0_16 = arith.constant 0 : index
    %17 = vector.load %arg7[%c0_15, %c0_16] : memref<8x1xf32, #tpu.memory_space<vmem>>, vector<8x1xf32>
    %18 = vector.broadcast %17 : vector<8x1xf32> to vector<8x2xf32>
    %19 = arith.addf %16, %18 : vector<8x2xf32>
    %20 = tpu.iota {dimensions = array<i32: 0>} : vector<8x2xi32>
    %c4_i32 = arith.constant 4 : i32
    %21 = vector.broadcast %c4_i32 : i32 to vector<8x2xi32>
    %22 = arith.cmpi sge, %20, %21 : vector<8x2xi32>
    %cst_17 = arith.constant -2.000000e+01 : f32
    %cst_18 = arith.constant 2.000000e+00 : f32
    %23 = vector.broadcast %cst_17 : f32 to vector<8x2xf32>
    %24 = arith.maximumf %23, %19 : vector<8x2xf32>
    %25 = vector.broadcast %cst_18 : f32 to vector<8x2xf32>
    %26 = arith.minimumf %25, %24 : vector<8x2xf32>
    %27 = arith.select %22, %26, %19 : vector<8x2xi1>, vector<8x2xf32>
    %c0_19 = arith.constant 0 : index
    %c0_20 = arith.constant 0 : index
    %28 = vector.load %arg8[%c0_19, %c0_20] : memref<8x2xf32, #tpu.memory_space<vmem>>, vector<8x2xf32>
    tpu.vector_store %arg8[%c0_19, %c0_20], %27 {strides = array<i32>} : memref<8x2xf32, #tpu.memory_space<vmem>>, vector<8x2xf32>,
    return
  }
  func.func @transform_0(%arg0: i32) -> (i32, i32) {
    %c0_i32 = arith.constant 0 : i32
    %c0_i32_0 = arith.constant 0 : i32
    return %arg0, %c0_i32 : i32, i32
  }
  func.func @transform_1(%arg0: i32) -> (i32, i32) {
    %c0_i32 = arith.constant 0 : i32
    %c0_i32_0 = arith.constant 0 : i32
    %c0_i32_1 = arith.constant 0 : i32
    return %c0_i32, %c0_i32_0 : i32, i32
  }
  func.func @transform_2(%arg0: i32) -> (i32, i32) {
    %c0_i32 = arith.constant 0 : i32
    %c0_i32_0 = arith.constant 0 : i32
    %c0_i32_1 = arith.constant 0 : i32
    return %c0_i32, %c0_i32_0 : i32, i32
  }
  func.func @transform_3(%arg0: i32) -> (i32, i32) {
    %c0_i32 = arith.constant 0 : i32
    %c0_i32_0 = arith.constant 0 : i32
    %c0_i32_1 = arith.constant 0 : i32
    return %c0_i32, %c0_i32_0 : i32, i32
  }
  func.func @transform_4(%arg0: i32) -> (i32, i32) {
    %c0_i32 = arith.constant 0 : i32
    %c0_i32_0 = arith.constant 0 : i32
    %c0_i32_1 = arith.constant 0 : i32
    return %c0_i32, %c0_i32_0 : i32, i32
  }
  func.func @transform_5(%arg0: i32) -> (i32, i32) {
    %c0_i32 = arith.constant 0 : i32
    %c0_i32_0 = arith.constant 0 : i32
    %c0_i32_1 = arith.constant 0 : i32
    return %c0_i32, %c0_i32_0 : i32, i32
  }
  func.func @transform_6(%arg0: i32) -> (i32, i32) {
    %c0_i32 = arith.constant 0 : i32
    %c0_i32_0 = arith.constant 0 : i32
    %c0_i32_1 = arith.constant 0 : i32
    return %c0_i32, %c0_i32_0 : i32, i32
  }
  func.func @transform_7(%arg0: i32) -> (i32, i32) {
    %c0_i32 = arith.constant 0 : i32
    %c0_i32_0 = arith.constant 0 : i32
    return %c0_i32, %arg0 : i32, i32
  }
}

</mosaic_0001>

<bundles_post_ra>
// kernel: tpu_custom_call.1
= control target key start
LH: loop header
LB: loop body
LE: loop exit
PB: predicated region body
PF: predicated region fallthrough
CT: control target
= control target key end

     0   :  { %vm55_vm0 = vcmask 179200   ;;  %v448_v2 = vmov 0   ;;  %vm188_vm1 = vcmask 261120   ;;  %v449_v35 = vmov 0.0   ;;  %s562_s0 = inlined_call_operand.vmem [shape: f32[2,22], index: 0, kind: input, shape index: {}]   ;;  %s563_s1 = inlined_call_operand.vmem [shape: f32[32,22], index: 1, kind: input, shape index: {}]   ;;  %s564_s2 = inlined_call_operand.vmem [shape: f32[32,1], index: 2, kind: input, shape index: {}]   ;;  %s565_s4 = inlined_call_operand.vmem [shape: f32[32,1], index: 4, kind: input, shape index: {}]   ;;  %s566_s6 = inlined_call_operand.vmem [shape: f32[8,1], index: 6, kind: input, shape index: {}]   ;;  %s567_s3 = inlined_call_operand.vmem [shape: f32[32,32], index: 3, kind: input, shape index: {}]   ;;  %s568_s5 = inlined_call_operand.vmem [shape: f32[8,32], index: 5, kind: input, shape index: {}]   ;;  %s569_s7 = inlined_call_operand.vmem [shape: f32[8,2], index: 7, kind: output, shape index: {}]  }
   0x1   :  { %v26_v0 = vld [vmem:[%s562_s0] sm:$0x3]  ;;  %446 = vset.pattern.permute.xlu0 %v448_v2  ;;  %447 = vset.pattern.permute.xlu1 %v448_v2  ;;  %v34_v3 = vld [vmem:[%s564_s2 + $0x18] sm:$0xff]  ;;  %v28_v4 = vld [vmem:[%s563_s1 + $0x8] sm:$0xff]  ;;  %vm450_vm2 = vmmov 0   ;;  %v370_v53 = vlaneseq  ;;  %vm376_vm4 = vcmask 15360  }
   0x2   :  { %v27_v1 = vld [vmem:[%s563_s1] sm:$0xff]  ;;  %410 = vmatprep.subr.msk.mxu0 %vm55_vm0, %v26_v0  ;;  %52 = vperm.xlu0 %446, %v34_v3   ;;  %v32_v5 = vld [vmem:[%s564_s2 + $0x8] sm:$0xff]  ;;  %v29_v6 = vld [vmem:[%s563_s1 + $0x10] sm:$0xff] }
   0x3   :  { %412 = vmatprep.mubr.msk.f32.mxu0 %vm55_vm0, %v27_v1  ;;  %411 = vmatpush3.xpose.msk.msra.mxu0 %vm55_vm0, %v26_v0  ;;  %v33_v7 = vld [vmem:[%s564_s2 + $0x10] sm:$0xff]  ;;  %v31_v8 = vld [vmem:[%s564_s2] sm:$0xff]  ;;  %v30_v9 = vld [vmem:[%s563_s1 + $0x18] sm:$0xff]  ;;  %v371_v56 = vshrl.u32 %v370_v53, 7 }
   0x4   :  { %42 = vperm.xlu1 %447, %v32_v5   ;;  %v167_v10 = vld [vmem:[%s565_s4 + $0x18] sm:$0xff]  ;;  %v166_v11 = vld [vmem:[%s565_s4 + $0x10] sm:$0xff]  ;;  %v165_v12 = vld [vmem:[%s565_s4 + $0x8] sm:$0xff]  ;;  %432 = vmatprep.subr.mxu0 %v449_v35 }
   0x5   :  { %v164_v13 = vld [vmem:[%s565_s4] sm:$0xff]  ;;  %v161_v32 = vld [vmem:[%s567_s3 + $0x8] sm:$0xff]  ;;  %v162_v33 = vld [vmem:[%s567_s3 + $0x10] sm:$0xff]  ;;  %vm372_vm3 = vcmp.ge.s32.totalorder %v371_v56, 4 }
   0x6   :  { %413 = vmatmul.mubr.msk.f32.vlgmr.msra.gmra.mxu0 %vm55_vm0, %v28_v4  ;;  %47 = vperm.xlu0 %446, %v33_v7   ;;  %v291_v14 = vld [vmem:[%s566_s6] sm:$0xff]  ;;  %v163_v34 = vld [vmem:[%s567_s3 + $0x18] sm:$0xff] }
   0x7   :  { %415 = vmatprep.mubr.msk.f32.mxu0 %vm55_vm0, %v29_v6  ;;  %v160_v15 = vld [vmem:[%s567_s3] sm:$0xff] }
   0x8   :  { %37 = vperm.xlu1 %447, %v31_v8   ;;  %426 = vmatprep.mubr.msk.f32.mxu1 %vm188_vm1, %v160_v15  ;;  %v290_v52 = vld [vmem:[%s568_s5] sm:$0xff] }
   0xa   :  { %416 = vmatmul.mubr.msk.f32.gmra.mxu0 %vm55_vm0, %v30_v9  ;;  %185 = vperm.xlu0 %446, %v167_v10  }
   0xb   :  { %440 = vmatprep.mubr.msk.f32.mxu0 %vm450_vm2, %v449_v35 }
   0xc   :  { %180 = vperm.xlu1 %447, %v166_v11  }
   0xe   :  { %175 = vperm.xlu0 %446, %v165_v12  }
  0x10   :  { %170 = vperm.xlu1 %447, %v164_v13  }
  0x12   :  { %294 = vperm.xlu0 %446, %v291_v14  }
  0x7d   :  { %v53_v16 = vpop.permute.xlu0 %52 }
  0x7f   :  { %v43_v18 = vpop.permute.xlu1 %42 }
  0x81   :  { %v48_v22 = vpop.permute.xlu0 %47 }
  0x83   :  { %v38_v27 = vpop.permute.xlu1 %37 }
  0x85   :  { %v186_v36 = vpop.permute.xlu0 %185 }
  0x87   :  { %v181_v38 = vpop.permute.xlu1 %180 }
  0x89   :  { %v176_v42 = vpop.permute.xlu0 %175 }
  0x8b   :  { %v171_v47 = vpop.permute.xlu1 %170 }
  0x8d   :  { %v295_v54 = vpop.permute.xlu0 %294 }
  0xc6   :  { %v414_v17 = vpop.f32.mrf.mxu0 }
  0xc7   :  { %v143_v24 = vadd.f32 %v414_v17, %v43_v18 }
  0xc8   :  { %v137_v19 = vpop.f32.mrf.mxu0 }
  0xc9   :  { %v138_v28 = vadd.f32 %v137_v19, %v38_v27  ;;  %v157_v30 = vmax.f32 %v143_v24, 0.0 }
  0xca   :  { %v417_v20 = vpop.f32.mrf.mxu0 }
  0xcb   :  { %v153_v21 = vadd.f32 %v417_v20, %v53_v16  ;;  %v156_v31 = vmax.f32 %v138_v28, 0.0 }
  0xcc   :  { %v147_v23 = vpop.f32.mrf.mxu0 }
  0xcd   :  { %v159_v25 = vmax.f32 %v153_v21, 0.0  ;;  %v148_v26 = vadd.f32 %v147_v23, %v48_v22 }
  0xcf   :  { %v158_v29 = vmax.f32 %v148_v26, 0.0  ;;  %418 = vmatprep.subr.mxu1 %v159_v25 }
  0xd0   :  { %419 = vmatpush3.msra.mxu1 %v159_v25 }
  0xd1   :  { %420 = vmatprep.subr.mxu1 %v158_v29 }
  0xd2   :  { %421 = vmatpush3.msra.mxu1 %v158_v29 }
  0xd3   :  { %422 = vmatprep.subr.mxu1 %v157_v30 }
  0xd4   :  { %423 = vmatpush3.msra.mxu1 %v157_v30 }
  0xd5   :  { %424 = vmatprep.subr.mxu1 %v156_v31 }
  0xd6   :  { %425 = vmatpush3.msra.mxu1 %v156_v31 }
  0xd7   :  { %427 = vmatmul.mubr.msk.f32.vlgmr.msra.gmra.mxu1 %vm188_vm1, %v161_v32 }
  0xd8   :  { %429 = vmatprep.mubr.msk.f32.mxu1 %vm188_vm1, %v162_v33 }
  0xdb   :  { %430 = vmatmul.mubr.msk.f32.gmra.mxu1 %vm188_vm1, %v163_v34 }
 0x197   :  { %v428_v37 = vpop.f32.mrf.mxu1 }
 0x198   :  { %v273_v44 = vadd.f32 %v428_v37, %v176_v42 }
 0x199   :  { %v267_v39 = vpop.f32.mrf.mxu1 }
 0x19a   :  { %v268_v48 = vadd.f32 %v267_v39, %v171_v47  ;;  %v287_v50 = vmax.f32 %v273_v44, 0.0 }
 0x19b   :  { %v431_v40 = vpop.f32.mrf.mxu1 }
 0x19c   :  { %v283_v41 = vadd.f32 %v431_v40, %v186_v36  ;;  %v286_v51 = vmax.f32 %v268_v48, 0.0 }
 0x19d   :  { %v277_v43 = vpop.f32.mrf.mxu1 }
 0x19e   :  { %v289_v45 = vmax.f32 %v283_v41, 0.0  ;;  %v278_v46 = vadd.f32 %v277_v43, %v181_v38 }
 0x1a0   :  { %v288_v49 = vmax.f32 %v278_v46, 0.0  ;;  %433 = vmatpush3.msra.mxu0 %v289_v45 }
 0x1a1   :  { %434 = vmatprep.subr.mxu0 %v449_v35 }
 0x1a2   :  { %435 = vmatpush3.msra.mxu0 %v288_v49 }
 0x1a3   :  { %436 = vmatprep.subr.mxu0 %v449_v35 }
 0x1a4   :  { %437 = vmatpush3.msra.mxu0 %v287_v50 }
 0x1a5   :  { %438 = vmatprep.subr.mxu0 %v449_v35 }
 0x1a6   :  { %439 = vmatpush3.msra.mxu0 %v286_v51 }
 0x1a7   :  { %441 = vmatmul.mubr.msk.f32.vlgmr.msra.gmra.mxu0 %vm188_vm1, %v290_v52 }
 0x267   :  { %v366_v55 = vpop.f32.mrf.mxu0 }
 0x268   :  { %v367_v57 = vadd.f32 %v366_v55, %v295_v54 }
 0x269   :  { %v442_v58 = vpop.f32.mrf.mxu0 }
 0x26a   :  { %v373_v59 = vmax.f32 %v367_v57, -20.0 }
 0x26c   :  { %v374_v60 = vmin.f32 %v373_v59, 2.0 }
 0x26e   :  { %v375_v61 = vsel %vm372_vm3, %v374_v60, %v367_v57 }
 0x26f   :  { %377 = vst.msk [vmem:[%s569_s7] sm:$0xff] %vm376_vm4, %v375_v61 }

</bundles_post_ra>
